<compile_context>
chip_gen: v5e
topology: v5e:2x2
jax: 0.10.0
libtpu: 0.0.40
codegen_flags: <defaults>
</compile_context>

<pallas_src>
import functools
import math

import jax
import jax.numpy as jnp
from jax.experimental import pallas as pl
from jax.experimental.pallas import tpu as pltpu

GEN_SIZE = 64
CHANNELS = 3
ACT_DTYPE = jnp.bfloat16                 # activation / matmul-operand dtype
_VMEM_LIMIT = 48 * 1024 * 1024           # safe on v5e(128M)/v6e(128M)/v7x(64M)


def _round_up(x, m):
    return (x + m - 1) // m * m


def _co_pad(c):
    # Keep C=64 native (full-dim block); pad other non-multiples of 128 up
    # (only the final Cout=3 conv actually needs padding).
    if c % 128 == 0 or c == 64:
        return c
    return _round_up(c, 128)


# ----------------------------------------------------------------------------
# Conv kernel: taps folded into an in-kernel accumulation over shifted slices
# ----------------------------------------------------------------------------
def _conv_mm_kernel(x_ref, w_ref, b_ref, o_ref, *, taps, tm, act):
    # x_ref : (1, R, Cin)    bf16   full padded+flattened image (VMEM resident)
    # w_ref : (T, Cin, tco)  bf16
    # b_ref : (1, tco)       f32
    # o_ref : (1, tm, tco)
    mb = pl.program_id(2)
    base = pl.multiple_of(mb * tm, tm)          # aligned (tm is 0-mod-8 / 512)
    span = tm + taps[-1]
    xs = x_ref[0, pl.ds(base, span), :]         # single aligned load
    tco = o_ref.shape[2]
    acc = jnp.zeros((tm, tco), jnp.float32)
    for t, off in enumerate(taps):              # unrolled: static value slices
        acc += jnp.dot(xs[off:off + tm, :], w_ref[t],
                       preferred_element_type=jnp.float32)
    y = acc + b_ref[...]
    if act == "tanh":                           # fused epilogue (EUP)
        y = jnp.tanh(y)
    o_ref[0, :, :] = y.astype(o_ref.dtype)


def _conv_rowflat(xp, w, b2, cout, kh, kw, *, keep_h=None, keep_w=None,
                  act=None, out_dtype=ACT_DTYPE):
    """Stride-1 VALID conv of pre-padded NHWC `xp` against w:(kh*kw,Cin,Co_pad)."""
    N, Hp, Wp, Cin = xp.shape
    T, Cin2, Co = w.shape
    assert T == kh * kw and Cin2 == Cin
    Ho, Wo = Hp - kh + 1, Wp - kw + 1
    out_rows = Ho * Wp
    tm = min(512, _round_up(out_rows, 8))
    Mpad = _round_up(out_rows, tm)
    max_off = (kh - 1) * Wp + (kw - 1)
    R = max(Hp * Wp, Mpad + max_off)
    xflat = xp.reshape(N, Hp * Wp, Cin)
    if R > Hp * Wp:
        xflat = jnp.pad(xflat, ((0, 0), (0, R - Hp * Wp), (0, 0)))

    tco = min(Co, 256)
    if (Mpad // tm) * (Co // tco) < 2 and Co >= 256:
        tco = 128                                # keep both v7x TCs busy
    taps = tuple(i * Wp + j for i in range(kh) for j in range(kw))

    out = pl.pallas_call(
        functools.partial(_conv_mm_kernel, taps=taps, tm=tm, act=act),
        out_shape=jax.ShapeDtypeStruct((N, Mpad, Co), out_dtype),
        grid_spec=pltpu.PrefetchScalarGridSpec(
            num_scalar_prefetch=0,
            grid=(N, Co // tco, Mpad // tm),
            in_specs=[
                pl.BlockSpec((1, R, Cin), lambda n, cb, mb: (n, 0, 0)),
                pl.BlockSpec((T, Cin, tco), lambda n, cb, mb: (0, 0, cb)),
                pl.BlockSpec((1, tco), lambda n, cb, mb: (0, cb)),
            ],
            out_specs=pl.BlockSpec((1, tm, tco), lambda n, cb, mb: (n, mb, cb)),
        ),
        compiler_params=pltpu.CompilerParams(
            dimension_semantics=("parallel", "parallel", "parallel"),
            vmem_limit_bytes=_VMEM_LIMIT),
    )(xflat, w, b2)

    hh = keep_h if keep_h is not None else Ho
    ww = keep_w if keep_w is not None else Wo
    out = out[:, :out_rows, :].reshape(N, Ho, Wp, Co)
    return out[:, :hh, :ww, :cout]


def conv3x3(x, p, act=None, out_dtype=ACT_DTYPE):
    xp = jnp.pad(x, ((0, 0), (1, 1), (1, 1), (0, 0)))
    return _conv_rowflat(xp, p['w'], p['b'], p['cout'], 3, 3,
                         act=act, out_dtype=out_dtype)


def conv1x1(x, p, out_dtype=ACT_DTYPE):
    return _conv_rowflat(x, p['w'], p['b'], p['cout'], 1, 1, out_dtype=out_dtype)


def conv4x4_s2(x, p, out_dtype=ACT_DTYPE):
    # 4x4 / stride 2 / pad 1 conv == 2x2 / stride 1 conv over a space-to-depth
    # transform of the (1,3)-padded input (weights repacked at init).
    N, H, W, Cin = x.shape
    xp = jnp.pad(x, ((0, 0), (1, 3), (1, 3), (0, 0)))
    H2, W2 = (H + 4) // 2, (W + 4) // 2
    xs = xp.reshape(N, H2, 2, W2, 2, Cin).transpose(0, 1, 3, 2, 4, 5)
    xs = xs.reshape(N, H2, W2, 4 * Cin)
    return _conv_rowflat(xs, p['w'], p['b'], p['cout'], 2, 2,
                         keep_h=H // 2, keep_w=W // 2, out_dtype=out_dtype)


def dense(z, p):
    B, K = z.shape
    x = z.astype(ACT_DTYPE).reshape(1, B, 1, K)
    y = _conv_rowflat(x, p['w'], p['b'], p['cout'], 1, 1)
    return y.reshape(B, p['cout'])


def upsample2(x):
    # TODO(synk): fold nearest-neighbor upsample into the following conv's tap
    # indexing instead of materializing the 2x copy (pure data-movement glue).
    return jnp.repeat(jnp.repeat(x, 2, axis=1), 2, axis=2)


# ----------------------------------------------------------------------------
# InstanceNorm2d (affine) + optional fused ReLU / residual add
# ----------------------------------------------------------------------------
def _in_kernel(*refs, eps, relu, fuse_res):
    if fuse_res:
        x_ref, r_ref, g_ref, b_ref, o_ref = refs
    else:
        x_ref, g_ref, b_ref, o_ref = refs
    x = x_ref[...].astype(jnp.float32)                  # (1, HW, C)
    n = x.shape[1]
    s1 = jnp.sum(x, axis=1, keepdims=True)
    s2 = jnp.sum(x * x, axis=1, keepdims=True)          # single pass
    mean = s1 * (1.0 / n)
    var = s2 * (1.0 / n) - mean * mean                  # biased var (PyTorch IN)
    y = (x - mean) * jax.lax.rsqrt(var + eps)
    y = y * g_ref[...] + b_ref[...]
    if fuse_res:
        y = y + r_ref[...].astype(jnp.float32)          # residual fused here
    if relu:
        y = jnp.maximum(y, 0.0)
    o_ref[...] = y.astype(o_ref.dtype)


def instance_norm(x, gamma, beta, *, relu=False, residual=None, eps=1e-5):
    N, H, W, C = x.shape
    HW = H * W
    xr = x.reshape(N, HW, C)
    fuse = residual is not None
    args = [xr]
    specs = [pl.BlockSpec((1, HW, C), lambda n: (n, 0, 0))]
    if fuse:
        args.append(residual.reshape(N, HW, C))
        specs.append(pl.BlockSpec((1, HW, C), lambda n: (n, 0, 0)))
    args += [gamma.reshape(1, 1, C).astype(jnp.float32),
             beta.reshape(1, 1, C).astype(jnp.float32)]
    specs += [pl.BlockSpec((1, 1, C), lambda n: (0, 0, 0)),
              pl.BlockSpec((1, 1, C), lambda n: (0, 0, 0))]
    out = pl.pallas_call(
        functools.partial(_in_kernel, eps=eps, relu=relu, fuse_res=fuse),
        out_shape=jax.ShapeDtypeStruct((N, HW, C), x.dtype),
        grid=(N,),
        in_specs=specs,
        out_specs=pl.BlockSpec((1, HW, C), lambda n: (n, 0, 0)),
        compiler_params=pltpu.CompilerParams(
            dimension_semantics=("parallel",),
            vmem_limit_bytes=_VMEM_LIMIT),
    )(*args)
    return out.reshape(N, H, W, C)


# ----------------------------------------------------------------------------
# Parameter init (xavier_uniform on PyTorch layouts) + repack for the kernels
# ----------------------------------------------------------------------------
def _xavier_conv(key, cout, cin, kh, kw):
    a = math.sqrt(6.0 / (cin * kh * kw + cout * kh * kw))
    return jax.random.uniform(key, (cout, cin, kh, kw), jnp.float32, -a, a)


def _uniform_bias(key, fan_in, n):
    bnd = 1.0 / math.sqrt(fan_in)
    return jax.random.uniform(key, (n,), jnp.float32, -bnd, bnd)


def _prep_conv(w_oihw, b):
    Cout, Cin, kh, kw = w_oihw.shape
    Co = _co_pad(Cout)
    w = jnp.transpose(w_oihw, (2, 3, 1, 0)).reshape(kh * kw, Cin, Cout)
    b2 = b.reshape(1, Cout).astype(jnp.float32)
    if Co > Cout:
        w = jnp.pad(w, ((0, 0), (0, 0), (0, Co - Cout)))
        b2 = jnp.pad(b2, ((0, 0), (0, Co - Cout)))
    return dict(w=w.astype(ACT_DTYPE), b=b2, cout=Cout)


def _prep_conv_s2(w_oihw, b):
    # 4x4/stride-2 -> equivalent 2x2/stride-1 conv over space-to-depth input.
    Cout, Cin, kh, kw = w_oihw.shape
    assert kh == 4 and kw == 4
    Co = _co_pad(Cout)
    w4 = jnp.transpose(w_oihw, (2, 3, 1, 0))                      # (4,4,Cin,Cout)
    w2 = w4.reshape(2, 2, 2, 2, Cin, Cout).transpose(0, 2, 1, 3, 4, 5)
    w2 = w2.reshape(4, 4 * Cin, Cout)            # tap=(bi,bj), chan=(si,sj,c)
    b2 = b.reshape(1, Cout).astype(jnp.float32)
    if Co > Cout:
        w2 = jnp.pad(w2, ((0, 0), (0, 0), (0, Co - Cout)))
        b2 = jnp.pad(b2, ((0, 0), (0, Co - Cout)))
    return dict(w=w2.astype(ACT_DTYPE), b=b2, cout=Cout)


def _prep_dense(w_out_in, b):
    Dout, Din = w_out_in.shape
    return dict(w=jnp.transpose(w_out_in)[None].astype(ACT_DTYPE),  # (1,Din,Dout)
                b=b.reshape(1, Dout).astype(jnp.float32), cout=Dout)


def _init_resblock(key, cin, cout):
    k = jax.random.split(key, 6)
    return dict(
        conv1=_prep_conv(_xavier_conv(k[0], cout, cin, 3, 3),
                         _uniform_bias(k[1], cin * 9, cout)),
        conv2=_prep_conv(_xavier_conv(k[2], cout, cout, 3, 3),
                         _uniform_bias(k[3], cout * 9, cout)),
        sc=_prep_conv(_xavier_conv(k[4], cout, cin, 1, 1),
                      _uniform_bias(k[5], cin, cout)),
        in1_g=jnp.ones((cout,), jnp.float32), in1_b=jnp.zeros((cout,), jnp.float32),
        in2_g=jnp.ones((cout,), jnp.float32), in2_b=jnp.zeros((cout,), jnp.float32),
    )


def init_generator(key, z_dim, c_dim, s_dim):
    G = GEN_SIZE
    k = jax.random.split(key, 16)
    p = {}
    dout = 4 * 4 * G * 2
    a = math.sqrt(6.0 / (z_dim + dout))
    p['dense'] = _prep_dense(
        jax.random.uniform(k[0], (dout, z_dim), jnp.float32, -a, a),
        _uniform_bias(k[1], z_dim, dout))
    p['final'] = _prep_conv(_xavier_conv(k[2], CHANNELS, G, 3, 3),
                            _uniform_bias(k[3], G * 9, CHANNELS))
    cin_i = G * 4 + c_dim + G * 2
    p['ci'] = _prep_conv(_xavier_conv(k[4], G * 4, cin_i, 3, 3),
                         _uniform_bias(k[5], cin_i * 9, G * 4))
    p['s1'] = _prep_conv_s2(_xavier_conv(k[6], G, s_dim, 4, 4),
                            _uniform_bias(k[7], s_dim * 16, G))
    p['s2'] = _prep_conv_s2(_xavier_conv(k[8], G * 2, G, 4, 4),
                            _uniform_bias(k[9], G * 16, G * 2))
    p['rb1'] = _init_resblock(k[10], G * 16, G * 16)
    p['rb2'] = _init_resblock(k[11], G * 16, G * 8)
    p['rb3'] = _init_resblock(k[12], G * 8, G * 4)
    p['rb4'] = _init_resblock(k[13], G * 4, G * 2)
    p['rb5'] = _init_resblock(k[14], G * 2, G)
    p['m1_in_g'] = jnp.ones((G * 4,), jnp.float32); p['m1_in_b'] = jnp.zeros((G * 4,), jnp.float32)
    p['m2_in_g'] = jnp.ones((G,), jnp.float32);     p['m2_in_b'] = jnp.zeros((G,), jnp.float32)
    p['s_in1_g'] = jnp.ones((G,), jnp.float32);     p['s_in1_b'] = jnp.zeros((G,), jnp.float32)
    p['s_in2_g'] = jnp.ones((G * 2,), jnp.float32); p['s_in2_b'] = jnp.zeros((G * 2,), jnp.float32)
    return p


# ----------------------------------------------------------------------------
# Forward pass
# ----------------------------------------------------------------------------
def resblock_forward(x, p):
    # main:   conv1 -> IN+ReLU -> Up2 -> conv2 -> IN (+ shortcut, ReLU fused)
    y = conv3x3(x, p['conv1'])
    y = instance_norm(y, p['in1_g'], p['in1_b'], relu=True)
    y = upsample2(y)
    y = conv3x3(y, p['conv2'])
    # bypass: Up2 -> 1x1 conv  ==  1x1 conv -> Up2 (pointwise conv commutes
    # with nearest upsample) -> 4x fewer shortcut FLOPs, exact semantics.
    sc = upsample2(conv1x1(x, p['sc']))
    return instance_norm(y, p['in2_g'], p['in2_b'], relu=True, residual=sc)


def generator_forward(params, z, c, s_nchw):
    G = GEN_SIZE
    h = dense(z, params['dense'])                          # (Bz, 2048)
    h = h.reshape(-1, G * 16, 4, 4)                        # NCHW view (batch folds 8->1)
    h = jnp.transpose(h, (0, 2, 3, 1))                     # -> NHWC
    h = resblock_forward(h, params['rb1'])                 # (N,8,8,1024)
    h = resblock_forward(h, params['rb2'])                 # (N,16,16,512)
    h = resblock_forward(h, params['rb3'])                 # (N,32,32,256)
    h = instance_norm(h, params['m1_in_g'], params['m1_in_b'], relu=True)

    s = jnp.transpose(s_nchw, (0, 2, 3, 1)).astype(ACT_DTYPE)
    s = conv4x4_s2(s, params['s1'])                        # (N,64,64,64)
    s = instance_norm(s, params['s_in1_g'], params['s_in1_b'], relu=True)
    s = conv4x4_s2(s, params['s2'])                        # (N,32,32,128)
    s = instance_norm(s, params['s_in2_g'], params['s_in2_b'], relu=True)

    N, Hh, Wh, _ = h.shape
    c_map = jnp.broadcast_to(c.astype(ACT_DTYPE)[:, None, None, :],
                             (N, Hh, Wh, c.shape[1]))
    hcs = jnp.concatenate([h, c_map, s], axis=-1)          # (N,32,32,400)

    y = conv3x3(hcs, params['ci'])                         # (N,32,32,256)
    y = resblock_forward(y, params['rb4'])                 # (N,64,64,128)
    y = resblock_forward(y, params['rb5'])                 # (N,128,128,64)
    y = instance_norm(y, params['m2_in_g'], params['m2_in_b'], relu=True)
    y = conv3x3(y, params['final'], act='tanh', out_dtype=jnp.float32)  # fused Tanh
    return jnp.transpose(y, (0, 3, 1, 2))                  # -> NCHW (N,3,128,128)


# ----------------------------------------------------------------------------
if __name__ == "__main__":
    Z_DIM, C_DIM, S_DIM = 32, 16, 3
    key = jax.random.PRNGKey(0)
    kp, kz, kc, ks = jax.random.split(key, 4)
    params = init_generator(kp, Z_DIM, C_DIM, S_DIM)

    # z batch 8 folds to image batch 1 via view(-1, 1024, 4, 4) (as in PyTorch).
    z = jax.random.normal(kz, (8, Z_DIM), jnp.float32)
    c = jax.random.normal(kc, (1, C_DIM), jnp.float32)
    s = jax.random.normal(ks, (1, S_DIM, 128, 128), jnp.float32)  # NCHW like torch

    out = generator_forward(params, z, c, s)
    out = jax.block_until_ready(out)
    assert out.shape == (1, CHANNELS, 128, 128), out.shape
    assert bool(jnp.all(jnp.isfinite(out)))
    print("KERNEL_OK")
</pallas_src>

<mosaic_0001>
module attributes {stable_mosaic.version = 11 : i64} {
  func.func @_conv_mm_kernel(%arg0: i32, %arg1: i32, %arg2: i32, %arg3: memref<1x8x32xbf16, #tpu.memory_space<vmem>>, %arg4: memref<1x32x256xbf16, #tpu.memory_space<vmem>>, %arg5: memref<1x256xf32, #tpu.memory_space<vmem>>, %arg6: memref<1x8x256xbf16, #tpu.memory_space<vmem>>) attributes {dimension_semantics = [#tpu.dimension_semantics<parallel>, #tpu.dimension_semantics<parallel>, #tpu.dimension_semantics<parallel>], iteration_bounds = array<i64: 1, 8, 1>, scalar_prefetch = 0 : i64, scratch_operands = 0 : i64, tpu.core_type = #tpu.core_type<tc>, window_params = [{transform_indices = @transform_0, window_bounds = array<i64: 1, 8, 32>}, {transform_indices = @transform_1, window_bounds = array<i64: 1, 32, 256>}, {transform_indices = @transform_2, window_bounds = array<i64: 1, 256>}, {transform_indices = @transform_3, window_bounds = array<i64: 1, 8, 256>}]} {
    %c8_i32 = arith.constant 8 : i32
    %0 = arith.muli %arg2, %c8_i32 : i32
    %1 = tpu.assume_multiple %0, 8 : i32
    %c0 = arith.constant 0 : index
    %2 = arith.index_cast %1 : i32 to index
    %c0_0 = arith.constant 0 : index
    %3 = vector.load %arg3[%c0, %2, %c0_0] : memref<1x8x32xbf16, #tpu.memory_space<vmem>>, vector<1x8x32xbf16>
    %4 = vector.shape_cast %3 : vector<1x8x32xbf16> to vector<8x32xbf16>
    %cst = arith.constant 0.000000e+00 : f32
    %5 = vector.broadcast %cst : f32 to vector<8x256xf32>
    %c0_1 = arith.constant 0 : index
    %c0_2 = arith.constant 0 : index
    %c0_3 = arith.constant 0 : index
    %6 = vector.load %arg4[%c0_1, %c0_2, %c0_3] : memref<1x32x256xbf16, #tpu.memory_space<vmem>>, vector<1x32x256xbf16>
    %7 = vector.shape_cast %6 : vector<1x32x256xbf16> to vector<32x256xbf16>
    %cst_4 = arith.constant dense<0.000000e+00> : vector<8x256xf32>
    %8 = tpu.matmul %4, %7, %cst_4 {dimension_numbers = #tpu.dot_dimension_numbers<[1], [0], [0], [1], [0, 0, 1, 1], [], []>} : vector<8x32xbf16>, vector<32x256xbf16>, vector<8x256xf32> -> vector<8x256xf32>
    %9 = arith.addf %5, %8 : vector<8x256xf32>
    %c0_5 = arith.constant 0 : index
    %c0_6 = arith.constant 0 : index
    %10 = vector.load %arg5[%c0_5, %c0_6] : memref<1x256xf32, #tpu.memory_space<vmem>>, vector<1x256xf32>
    %11 = vector.broadcast %10 : vector<1x256xf32> to vector<8x256xf32>
    %12 = arith.addf %9, %11 : vector<8x256xf32>
    %13 = arith.truncf %12 : vector<8x256xf32> to vector<8x256xbf16>
    %c0_7 = arith.constant 0 : index
    %c0_8 = arith.constant 0 : index
    %c0_9 = arith.constant 0 : index
    %14 = vector.load %arg6[%c0_7, %c0_8, %c0_9] : memref<1x8x256xbf16, #tpu.memory_space<vmem>>, vector<1x8x256xbf16>
    %15 = vector.shape_cast %14 : vector<1x8x256xbf16> to vector<8x256xbf16>
    %16 = vector.shape_cast %13 : vector<8x256xbf16> to vector<1x8x256xbf16>
    tpu.vector_store %arg6[%c0_7, %c0_8, %c0_9], %16 {strides = array<i32>} : memref<1x8x256xbf16, #tpu.memory_space<vmem>>, vector<1x8x256xbf16>,
    return
  }
  func.func @transform_0(%arg0: i32, %arg1: i32, %arg2: i32) -> (i32, i32, i32) {
    %c0_i32 = arith.constant 0 : i32
    %c0_i32_0 = arith.constant 0 : i32
    %c0_i32_1 = arith.constant 0 : i32
    return %arg0, %c0_i32, %c0_i32_0 : i32, i32, i32
  }
  func.func @transform_1(%arg0: i32, %arg1: i32, %arg2: i32) -> (i32, i32, i32) {
    %c0_i32 = arith.constant 0 : i32
    %c0_i32_0 = arith.constant 0 : i32
    %c0_i32_1 = arith.constant 0 : i32
    return %c0_i32, %c0_i32_0, %arg1 : i32, i32, i32
  }
  func.func @transform_2(%arg0: i32, %arg1: i32, %arg2: i32) -> (i32, i32) {
    %c0_i32 = arith.constant 0 : i32
    %c0_i32_0 = arith.constant 0 : i32
    return %c0_i32, %arg1 : i32, i32
  }
  func.func @transform_3(%arg0: i32, %arg1: i32, %arg2: i32) -> (i32, i32, i32) {
    %c0_i32 = arith.constant 0 : i32
    return %arg0, %arg2, %arg1 : i32, i32, i32
  }
}

</mosaic_0001>

<bundles_post_ra>
// kernel: tpu_custom_call.1
= control target key start
LH: loop header
LB: loop body
LE: loop exit
PB: predicated region body
PF: predicated region fallthrough
CT: control target
= control target key end

     0   :  { %8 = vsyncpa [#allocation3], 0  ;;  %s986_s0 = inlined_call_operand.hbm [shape: bf16[1,8,32], index: 0, kind: input, shape index: {}]   ;;  %s987_s1 = inlined_call_operand.hbm [shape: bf16[1,32,2048], index: 1, kind: input, shape index: {}]   ;;  %s988_s2 = inlined_call_operand.hbm [shape: f32[1,2048], index: 2, kind: input, shape index: {}]   ;;  %s989_s3 = inlined_call_operand.hbm [shape: bf16[1,8,2048], index: 3, kind: output, shape index: {}]  }
   0x1   :  { %9 = vsyncpa [#allocation6], 0 }
   0x2   :  { %11 = vsyncpa [#allocation6 + $0x1], 0 }
   0x3   :  { %12 = vsyncpa [#allocation4], 0 }
   0x4   :  { %14 = vsyncpa [#allocation4 + $0x1], 0  ;;  %s814_s12 = smov 0   ;;  %s816_s13 = smov 0  }
   0x5   :  { %s818_s14 = smov 0   ;;  %s820_s15 = smov 0  }
   0x6   :  { %s822_s16 = smov 0   ;;  %s824_s17 = smov 0  }
   0x7 LB: > { %s35_s18 = sadd.s32 1, %s784_s16  ;;  %s72_s19 = sadd.s32 1, %s776_s14  ;;  %s788_s17 = sphi %s824_s17, %s20_s17   ;;  %s784_s16 = sphi %s822_s16, %s1000_s16   ;;  %s780_s15 = sphi %s820_s15, %s999_s15   ;;  %s776_s14 = sphi %s818_s14, %s998_s14   ;;  %s772_s13 = sphi %s816_s13, %s997_s13   ;;  %s768_s12 = sphi %s814_s12, %s996_s12  }
   0x8   : > { %p37_p0 = scmp.ge.s32.totalorder %s35_s18, 8  ;;  %p79_p1 = scmp.ne.s32.totalorder %s776_s14, %s772_s13 }
   0x9   : > { %p80_p2 = scmp.eq.s32.totalorder %s788_s17, 0  ;;  %p557_p4 = scmp.lt.s32.totalorder %s788_s17, 8 }
   0xa   : > { %s1002_s18 = smov (%p37_p0, %s35_s18), 0  ;;  %s179_s22 = sand.u32 1, %s788_s17  }
   0xb   : > { %p854_p3 = por %p80_p2, %p79_p1  ;;  %s69_s21 = ssub.s32 %s784_s16, %s1002_s18 }
   0xc   : > { %p70_p5 = scmp.eq.s32.totalorder %s69_s21, 0  ;;  %s181_s23 = sand.u32 1, %s776_s14  }
   0xd   : > { %s525_s24 = sshll.u32 %s784_s16, 3  ;;  %s492_s26 = sshll.u32 %s181_s23, 5 }
   0xe   : > { %s865_s25 = scalar_select %p70_p5, %s776_s14, %s72_s19  }
   0xf   : > { %s188_s29 = scalar_lea.hbm %s987_s1, %s525_s24  ;;  %s183_s4 = scalar_lea.vmem [#allocation5], %s492_s26 }
  0x10   : > { %s189_s30 = sshll.u32 %s188_s29, 4  ;;  %s191_s5 = sshll.u32 %s183_s4, 4  ;;  %s190_s30 = int_to_ptr.hbm [resolvable:$true] %s189_s30  ;;  %s192_s5 = int_to_ptr.vmem [resolvable:$true] %s191_s5 }
  0x11   : > { %p876_p6 = pnand %p557_p4, %p854_p3  ;;  %s880_s7 = scalar_lea.sflag [#allocation6], %s179_s22 }
  0x12   : > { %s790_s8 = smov 1024   ;;  %s791_s9 = smov 128  }
  0x13   : > { %s792_s10 = smov 8   ;;  %s886_s11 = sadd.s32 4294967295, %s788_s17  }
  0x14   : > { %548 = dma.hbm_to_vmem [thread:$0]  (!%p876_p6), %s190_s30, 512, %s192_s5, %s880_s7, %s790_s8, %s791_s9, %s792_s10  }
  0x15   : > { %s488_s19 = sadd.s32 4294967294, %s788_s17   ;;  %p85_p7 = scmp.ne.s32.totalorder %s772_s13, %s768_s12 }
  0x16   : > { %p86_p8 = scmp.eq.s32.totalorder %s886_s11, 0  ;;  %p139_p9 = scmp.eq.s32.totalorder %s886_s11, 7 }
  0x17   : > { %p145_p10 = scmp.eq.s32.totalorder %s488_s19, 7  ;;  %p489_p12 = scmp.ge.s32.totalorder %s788_s17, 1 }
  0x18   : > { %p895_p11 = por %p86_p8, %p85_p7  ;;  %p903_p13 = por %p139_p9, %p79_p1 }
  0x19   : > { %p907_p0 = por %p145_p10, %p85_p7  ;;  %p152_p2 = scmp.lt.s32.totalorder %s788_s17, 9 }
  0x1a   : > { %s166_s27 = sshll.u32 %s986_s0, 4  ;;  %s793_s29 = smov [#allocation2]   ;;  %s167_s27 = int_to_ptr.hbm [resolvable:$true] %s166_s27 }
  0x1b   : > { %p915_p3 = pnand %p489_p12, %p152_p2  ;;  %s168_s30 = sshll.u32 %s793_s29, 4  ;;  %s169_s30 = int_to_ptr.vmem [resolvable:$true] %s168_s30 }
  0x1c   : > { %s495_s4 = sshll.u32 %s181_s23, 1  ;;  %s496_s5 = sshll.u32 %s784_s16, 1 }
  0x1d   : > { %p541_p1 = pneg %p915_p3  ;;  %s209_s10 = scalar_lea.hbm %s988_s2, %s496_s5 }
  0x1e   : > { %s211_s19 = sshll.u32 %s209_s10, 4  ;;  %s205_s24 = scalar_lea.vmem [#allocation7], %s495_s4  ;;  %s212_s19 = int_to_ptr.hbm [resolvable:$true] %s211_s19 }
  0x1f   : > { %p542_p4 = pnand %p541_p1, %p86_p8  ;;  %s213_s26 = sshll.u32 %s205_s24, 4  ;;  %s214_s26 = int_to_ptr.vmem [resolvable:$true] %s213_s26 }
  0x20   : > { %551 = dma.hbm_to_vmem [thread:$0]  (!%p876_p6), %s212_s19, 32, %s214_s26, %s880_s7  }
  0x21   : > { %544 = dma.hbm_to_vmem [thread:$0]  (!%p542_p4), %s167_s27, 64, %s169_s30, [#allocation3]  }
  0x22   : > { %222 = sbr.rel (%p915_p3) target bundleno = 189 (0xbd), region = 32 }
  0x27   : > { %755 = dma.done.wait (%p86_p8), [#allocation3], 64  }
  0x28   : > { %757 = vsyncadd (%p86_p8), [#allocation3], 4294967232  ;;  %s229_s23 = sand.u32 1, %s886_s11   ;;  %s940_s29 = sand.u32 1, %s772_s13  }
  0x29   : > { %s499_s27 = sshll.u32 %s940_s29, 5  ;;  %s230_s30 = scalar_lea.sflag [#allocation6], %s229_s23 }
  0x2a   : > { %s233_s6 = scalar_lea.vmem [#allocation5], %s499_s27 }
  0x2b   : > { %759 = dma.done.wait (%p895_p11), %s230_s30, 544  }
  0x2c   : > { %761 = vsyncadd (%p895_p11), %s230_s30, 4294966752  ;;  %v512_v0 = vld [vmem:[%s233_s6 + $0x10] sm:$0xf]  ;;  %v529_v1 = vld [vmem:[%s233_s6 + $0x14] sm:$0xf0]  ;;  %vm312_vm0 = vcmask 261120  }
  0x2d   : > { %v528_v2 = vld [vmem:[%s233_s6 + $0x14] sm:$0xf]  ;;  %v513_v3 = vor.u32 %v529_v1, %v512_v0  ;;  %v514_v4 = vld [vmem:[%s233_s6 + $0x18] sm:$0xf0]  ;;  %v504_v5 = vld [vmem:[%s233_s6] sm:$0xf] }
  0x2e   : > { %v527_v6 = vld [vmem:[%s233_s6 + $0x4] sm:$0xf0]  ;;  %v517_v7 = vor.u32 %v528_v2, %v514_v4  ;;  %v526_v8 = vld [vmem:[%s233_s6 + $0x4] sm:$0xf]  ;;  %v506_v9 = vld [vmem:[%s233_s6 + $0x8] sm:$0xf0] }
  0x2f   : > { %322 = vmatpush.bf16.msra.mxu0 %v513_v3  ;;  %v505_v10 = vor.u32 %v527_v6, %v504_v5  ;;  %v509_v11 = vor.u32 %v526_v8, %v506_v9  ;;  %v281_v12 = vld [vmem:[#allocation2] sm:$0xf]  ;;  %s500_s7 = sshll.u32 %s940_s29, 1  ;;  %s501_s20 = sshll.u32 %s940_s29, 3 }
  0x30   : > { %335 = vmatpush.bf16.msra.mxu1 %v517_v7  ;;  %s243_s11 = scalar_lea.vmem [#allocation7], %s500_s7  ;;  %s530_s28 = sshll.u32 %s780_s15, 3 }
  0x31   : > { %v286_v13 = vld [vmem:[%s243_s11] sm:$0x3]  ;;  %s360_s8 = scalar_lea.hbm %s989_s3, %s530_s28  ;;  %s271_s9 = scalar_lea.vmem [#allocation8], %s501_s20 }
  0x32   : > { %v288_v14 = vperm.slane %v286_v13, 0  ;;  %v289_v15 = vperm.slane %v286_v13, 1  ;;  %s362_s10 = sshll.u32 %s271_s9, 4  ;;  %s364_s19 = sshll.u32 %s360_s8, 4  ;;  %s363_s10 = int_to_ptr.vmem [resolvable:$true] %s362_s10  ;;  %s365_s19 = int_to_ptr.hbm [resolvable:$true] %s364_s19 }
  0x33   : > { %323 = vmatpush.bf16.msra.mxu0 %v505_v10  ;;  %s345_s24 = scalar_lea.sflag [#allocation4], %s940_s29  ;;  %s716_s15 = sshra.s32 %s365_s19, 4  ;;  %s717_s15 = int_to_ptr.hbm [resolvable:$true] %s716_s15 }
  0x34   : > { %336 = vmatpush.bf16.msra.mxu1 %v509_v11  ;;  %s718_s26 = scalar_lea.hbm %s717_s15, 8  ;;  %s722_s30 = scalar_lea.hbm %s989_s3, 64 }
  0x35   : > { %p719_p5 = scmp.ne.s32.totalorder %s717_s15, %s718_s26  ;;  %p723_p8 = scmp.lt.s32.totalorder %s717_s15, %s989_s3 }
  0x36   : > { %518 = vmatmul.msk.bf16.vlgmr.msra.gmra.mxu0 %vm312_vm0, %v281_v12  ;;  %p724_p9 = scmp.lt.s32.totalorder %s722_s30, %s718_s26 }
  0x37   : > { %519 = vmatmul.msk.bf16.vlgmr.msra.gmra.mxu1 %vm312_vm0, %v281_v12  ;;  %p720_p6 = pnand %p719_p5, %p903_p13 }
  0x38   : > { %p725_p10 = por %p724_p9, %p723_p8 }
  0x39   : > { %p721_p7 = pneg %p720_p6 }
  0x3b   : > { %p726_p11 = pnand %p725_p10, %p721_p7 }
  0xb3   : > { %v325_v16 = vpop.f32.mrf.mxu0 }
  0xb4   : > { %v326_v17 = vadd.f32 %v325_v16, %v288_v14  ;;  %v338_v18 = vpop.f32.mrf.mxu1 }
  0xb5   : > { %v339_v19 = vadd.f32 %v338_v18, %v289_v15 }
  0xb7   : > { %v342_v20 = vpack.c.bf16 %v339_v19, %v326_v17 }
  0xb9   : > { %343 = vst [vmem:[%s271_s9] sm:$0xff] %v342_v20 }
  0xba   : > { %729 = shalt.err (!%p726_p11)
}
  0xbb   : > { %539 = dma.vmem_to_hbm [thread:$0]  (%p903_p13), %s363_s10, 128, %s365_s19, %s345_s24   ;;  %v327_v21 = vpop.f32.mrf.mxu0 }
  0xbc   : > { %v340_v22 = vpop.f32.mrf.mxu1 }
  0xbd PF: > { %p559_p12 = scmp.ge.s32.totalorder %s788_s17, 2  ;;  %s376_s29 = sand.u32 1, %s768_s12  }
  0xbe   : > { %s377_s11 = scalar_lea.sflag [#allocation4], %s376_s29 }
  0xbf   : > { %p553_p2 = pnand %p559_p12, %p907_p0 }
  0xc1   : > { %p554_p3 = pneg %p553_p2 }
  0xc3   : > { %763 = dma.done.wait (%p554_p3), %s377_s11, 128  }
  0xc4   : > { %765 = vsyncadd (%p554_p3), %s377_s11, 4294967168  ;;  %s20_s17 = sadd.s32 1, %s788_s17   ;;  %s996_s12 = smov %s772_s13 }
  0xc5   : > { %p17_p1 = scmp.ge.s32.totalorder %s20_s17, 10   ;;  %s997_s13 = smov %s776_s14 }
  0xc6   : > { %s998_s14 = smov %s865_s25  ;;  %s999_s15 = smov %s784_s16 }
  0xc7   : > { %s1000_s16 = smov %s1002_s18  ;;  %19 = sbr.rel (!%p17_p1) target bundleno = 7 (0x7), region = 95 }
  0xcc   :  { %383 = vsyncpa [#allocation3], 1 }
  0xcd   :  { %385 = vsyncpa [#allocation3 + $0x1], 1 }
  0xce   :  { %386 = vsyncpa [#allocation6], 1 }
  0xcf   :  { %388 = vsyncpa [#allocation6 + $0x1], 1 }
  0xd0   :  { %389 = vsyncpa [#allocation4], 1 }
  0xd1   :  { %391 = vsyncpa [#allocation4 + $0x1], 1 }

</bundles_post_ra>
